<compile_context>
chip_gen: v7x
topology: tpu7x:2x2x1
jax: 0.10.0
libtpu: 0.0.40
codegen_flags: <defaults>
</compile_context>

<pallas_src>
import math

import numpy as np
import jax
import jax.numpy as jnp
from jax.experimental import pallas as pl
from jax.experimental.pallas import tpu as pltpu


def _bicubic_matrix(in_size: int, out_size: int) -> np.ndarray:
    """Dense (out_size, in_size) matrix reproducing torch.nn.functional.interpolate
    with mode='bicubic', align_corners=False, antialias=False (A = -0.75)."""
    A = -0.75

    def c1(x):  # |x| <= 1
        return ((A + 2.0) * x - (A + 3.0)) * x * x + 1.0

    def c2(x):  # 1 < |x| < 2
        return ((A * x - 5.0 * A) * x + 8.0 * A) * x - 4.0 * A

    scale = in_size / out_size
    R = np.zeros((out_size, in_size), dtype=np.float32)
    for i in range(out_size):
        real = (i + 0.5) * scale - 0.5
        x0 = int(math.floor(real))
        t = real - x0
        coeffs = (c2(t + 1.0), c1(t), c1(1.0 - t), c2(2.0 - t))
        for k, wgt in enumerate(coeffs):
            idx = min(max(x0 - 1 + k, 0), in_size - 1)  # border clamp (as PyTorch)
            R[i, idx] += wgt
    return R


def _make_kernel(stage_meta, c_out, has_rt):
    """stage_meta: tuple of (c_in, hw_in, is_identity) per stage (static)."""
    num_stages = len(stage_meta)

    def kernel(*refs):
        x_refs = refs[:num_stages]                      # each (c_in, hw_in)
        idx = num_stages
        rt_ref = None
        if has_rt:
            rt_ref = refs[idx]                          # (sum_hw_in, hw_out)
            idx += 1
        w_ref = refs[idx]                               # (S*c_out, c_in_max)
        b_ref = refs[idx + 1]                           # (S*c_out, hw_out)
        o_ref = refs[idx + 2]                           # (S*c_out, hw_out)

        rt_off = 0
        for s, (c_in, hw_in, ident) in enumerate(stage_meta):
            x = x_refs[s][...]                          # (c_in, hw_in)
            if ident:
                # Spatial size already matches the target: bicubic resize is
                # exactly the identity -> skip the resize matmul.
                r = x
            else:
                r = jnp.dot(x, rt_ref[rt_off:rt_off + hw_in, :],
                            preferred_element_type=jnp.float32)   # (c_in, hw_out)
                rt_off += hw_in
            w = w_ref[s * c_out:(s + 1) * c_out, :c_in]            # (c_out, c_in)
            y = jnp.dot(w, r, preferred_element_type=jnp.float32)  # (c_out, hw_out)
            y = y + b_ref[s * c_out:(s + 1) * c_out, :]
            o_ref[s * c_out:(s + 1) * c_out, :] = y.astype(o_ref.dtype)

    return kernel


def upsample_forward(features, weights, biases):
    """Equivalent of Upsample.forward: bicubic-resize every feature to the
    spatial size of features[-1], then apply the per-stage 1x1 conv."""
    num_stages = len(features)
    n = features[0].shape[0]
    h_out, w_out = features[-1].shape[-2:]
    hw_out = h_out * w_out
    c_out = weights[0].shape[0]
    c_in_max = max(w.shape[1] for w in weights)
    out_dtype = features[0].dtype

    stage_meta = []
    x_inputs, x_specs = [], []
    rt_blocks = []
    for x in features:
        _, c_in, h_in, w_in = x.shape
        hw_in = h_in * w_in
        ident = (h_in == h_out) and (w_in == w_out)
        if not ident:
            rh = _bicubic_matrix(h_in, h_out)                       # (H_out, H_in)
            rw = _bicubic_matrix(w_in, w_out)                       # (W_out, W_in)
            rt_blocks.append(np.kron(rh, rw).T.astype(np.float32))  # (HW_in, HW_out)
        stage_meta.append((c_in, hw_in, ident))
        x_inputs.append(x.reshape(n, c_in, hw_in))      # wrapper-side layout plumbing
        x_specs.append(pl.BlockSpec((pl.Squeezed(), c_in, hw_in),
                                    lambda i: (i, 0, 0)))

    has_rt = bool(rt_blocks)

    # Packed constants (each DMA'd once thanks to constant index maps).
    w_packed = jnp.concatenate(
        [jnp.pad(w, ((0, 0), (0, c_in_max - w.shape[1]))) for w in weights], axis=0)
    b_packed = jnp.broadcast_to(jnp.concatenate(biases)[:, None],
                                (num_stages * c_out, hw_out))

    inputs = list(x_inputs)
    in_specs = list(x_specs)
    if has_rt:
        rt_packed = jnp.asarray(np.concatenate(rt_blocks, axis=0))  # (sum_hw_in, hw_out)
        inputs.append(rt_packed)
        in_specs.append(pl.BlockSpec(rt_packed.shape, lambda i: (0, 0)))
    inputs += [w_packed, b_packed]
    in_specs += [pl.BlockSpec(tuple(w_packed.shape), lambda i: (0, 0)),
                 pl.BlockSpec(tuple(b_packed.shape), lambda i: (0, 0))]

    out_shape = jax.ShapeDtypeStruct((n, num_stages * c_out, hw_out), out_dtype)
    out_spec = pl.BlockSpec((pl.Squeezed(), num_stages * c_out, hw_out),
                            lambda i: (i, 0, 0))

    packed = pl.pallas_call(
        _make_kernel(tuple(stage_meta), c_out, has_rt),
        out_shape=out_shape,
        grid=(n,),
        in_specs=in_specs,
        out_specs=out_spec,
        compiler_params=pltpu.CompilerParams(
            dimension_semantics=("parallel",)),
    )(*inputs)

    packed = packed.reshape(n, num_stages, c_out, h_out, w_out)
    return [packed[:, s] for s in range(num_stages)]


def init_upsample_params(key, out_channels, widths):
    """Deterministic params with nn.Conv2d(in_c, out_c, kernel_size=1) shapes
    (weights stored as (out_c, in_c) since the 1x1 spatial dims are trivial)."""
    weights, biases = [], []
    for in_c in widths:
        key, kw, kb = jax.random.split(key, 3)
        bound = 1.0 / math.sqrt(in_c)  # fan_in of a 1x1 conv
        weights.append(jax.random.uniform(
            kw, (out_channels, in_c), minval=-bound, maxval=bound, dtype=jnp.float32))
        biases.append(jax.random.uniform(
            kb, (out_channels,), minval=-bound, maxval=bound, dtype=jnp.float32))
    return weights, biases


if __name__ == "__main__":
    out_channels = 16
    widths = [8, 16, 32]        # in_channels of each stage
    spatials = [16, 8, 4]       # last feature defines out_size = (4, 4)
    batch = 2

    key = jax.random.PRNGKey(0)
    key, *fkeys = jax.random.split(key, len(widths) + 1)
    features = [
        jax.random.normal(fk, (batch, c, s, s), dtype=jnp.float32)
        for fk, c, s in zip(fkeys, widths, spatials)
    ]

    weights, biases = init_upsample_params(jax.random.PRNGKey(42), out_channels, widths)

    outs = upsample_forward(features, weights, biases)
    outs = [jax.block_until_ready(o) for o in outs]

    # Pure-JAX reference: separable bicubic matrices + 1x1 conv.
    h_out, w_out = features[-1].shape[-2:]
    for x, w, b, o in zip(features, weights, biases, outs):
        rh = jnp.asarray(_bicubic_matrix(x.shape[2], h_out))
        rw = jnp.asarray(_bicubic_matrix(x.shape[3], w_out))
        resized = jnp.einsum('nchw,uh,vw->ncuv', x, rh, rw)
        ref = jnp.einsum('kc,ncuv->nkuv', w, resized) + b[None, :, None, None]
        assert o.shape == (batch, out_channels, h_out, w_out), o.shape
        assert o.dtype == jnp.float32
        assert bool(jnp.all(jnp.isfinite(o)))
        assert bool(jnp.allclose(o, ref, atol=1e-3, rtol=1e-3)), \
            float(jnp.max(jnp.abs(o - ref)))
    print("KERNEL_OK")
</pallas_src>

<mosaic_0001>
module attributes {stable_mosaic.version = 11 : i64} {
  func.func @kernel(%arg0: i32, %arg1: memref<1x8x256xf32, #tpu.memory_space<vmem>>, %arg2: memref<1x16x64xf32, #tpu.memory_space<vmem>>, %arg3: memref<1x32x16xf32, #tpu.memory_space<vmem>>, %arg4: memref<320x16xf32, #tpu.memory_space<vmem>>, %arg5: memref<48x32xf32, #tpu.memory_space<vmem>>, %arg6: memref<48x16xf32, #tpu.memory_space<vmem>>, %arg7: memref<1x48x16xf32, #tpu.memory_space<vmem>>) attributes {dimension_semantics = [#tpu.dimension_semantics<parallel>], iteration_bounds = array<i64: 2>, scalar_prefetch = 0 : i64, scratch_operands = 0 : i64, tpu.core_type = #tpu.core_type<tc>, window_params = [{transform_indices = @transform_0, window_bounds = array<i64: 1, 8, 256>}, {transform_indices = @transform_1, window_bounds = array<i64: 1, 16, 64>}, {transform_indices = @transform_2, window_bounds = array<i64: 1, 32, 16>}, {pipeline_mode = #tpu.pipeline_mode<synchronous>, transform_indices = @transform_3, window_bounds = array<i64: 320, 16>}, {pipeline_mode = #tpu.pipeline_mode<synchronous>, transform_indices = @transform_4, window_bounds = array<i64: 48, 32>}, {pipeline_mode = #tpu.pipeline_mode<synchronous>, transform_indices = @transform_5, window_bounds = array<i64: 48, 16>}, {transform_indices = @transform_6, window_bounds = array<i64: 1, 48, 16>}]} {
    %c0 = arith.constant 0 : index
    %c0_0 = arith.constant 0 : index
    %c0_1 = arith.constant 0 : index
    %0 = vector.load %arg1[%c0, %c0_0, %c0_1] : memref<1x8x256xf32, #tpu.memory_space<vmem>>, vector<1x8x256xf32>
    %1 = vector.shape_cast %0 : vector<1x8x256xf32> to vector<8x256xf32>
    %c0_2 = arith.constant 0 : index
    %c0_3 = arith.constant 0 : index
    %2 = vector.load %arg4[%c0_2, %c0_3] : memref<320x16xf32, #tpu.memory_space<vmem>>, vector<256x16xf32>
    %cst = arith.constant dense<0.000000e+00> : vector<8x16xf32>
    %3 = tpu.matmul %1, %2, %cst {dimension_numbers = #tpu.dot_dimension_numbers<[1], [0], [0], [1], [0, 0, 1, 1], [], []>} : vector<8x256xf32>, vector<256x16xf32>, vector<8x16xf32> -> vector<8x16xf32>
    %c0_4 = arith.constant 0 : index
    %c0_5 = arith.constant 0 : index
    %4 = vector.load %arg5[%c0_4, %c0_5] : memref<48x32xf32, #tpu.memory_space<vmem>>, vector<16x8xf32>
    %cst_6 = arith.constant dense<0.000000e+00> : vector<16x16xf32>
    %5 = tpu.matmul %4, %3, %cst_6 {dimension_numbers = #tpu.dot_dimension_numbers<[1], [0], [0], [1], [0, 0, 1, 1], [], []>} : vector<16x8xf32>, vector<8x16xf32>, vector<16x16xf32> -> vector<16x16xf32>
    %c0_7 = arith.constant 0 : index
    %c0_8 = arith.constant 0 : index
    %6 = vector.load %arg6[%c0_7, %c0_8] : memref<48x16xf32, #tpu.memory_space<vmem>>, vector<16x16xf32>
    %7 = arith.addf %5, %6 : vector<16x16xf32>
    %c0_9 = arith.constant 0 : index
    %c0_10 = arith.constant 0 : index
    %c0_11 = arith.constant 0 : index
    %8 = vector.load %arg7[%c0_9, %c0_10, %c0_11] : memref<1x48x16xf32, #tpu.memory_space<vmem>>, vector<1x16x16xf32>
    %9 = vector.shape_cast %8 : vector<1x16x16xf32> to vector<16x16xf32>
    %10 = vector.shape_cast %7 : vector<16x16xf32> to vector<1x16x16xf32>
    tpu.vector_store %arg7[%c0_9, %c0_10, %c0_11], %10 {strides = array<i32>} : memref<1x48x16xf32, #tpu.memory_space<vmem>>, vector<1x16x16xf32>,
    %c0_12 = arith.constant 0 : index
    %c0_13 = arith.constant 0 : index
    %c0_14 = arith.constant 0 : index
    %11 = vector.load %arg2[%c0_12, %c0_13, %c0_14] : memref<1x16x64xf32, #tpu.memory_space<vmem>>, vector<1x16x64xf32>
    %12 = vector.shape_cast %11 : vector<1x16x64xf32> to vector<16x64xf32>
    %c256 = arith.constant 256 : index
    %c0_15 = arith.constant 0 : index
    %13 = vector.load %arg4[%c256, %c0_15] : memref<320x16xf32, #tpu.memory_space<vmem>>, vector<64x16xf32>
    %cst_16 = arith.constant dense<0.000000e+00> : vector<16x16xf32>
    %14 = tpu.matmul %12, %13, %cst_16 {dimension_numbers = #tpu.dot_dimension_numbers<[1], [0], [0], [1], [0, 0, 1, 1], [], []>} : vector<16x64xf32>, vector<64x16xf32>, vector<16x16xf32> -> vector<16x16xf32>
    %c16 = arith.constant 16 : index
    %c0_17 = arith.constant 0 : index
    %15 = vector.load %arg5[%c16, %c0_17] : memref<48x32xf32, #tpu.memory_space<vmem>>, vector<16x16xf32>
    %cst_18 = arith.constant dense<0.000000e+00> : vector<16x16xf32>
    %16 = tpu.matmul %15, %14, %cst_18 {dimension_numbers = #tpu.dot_dimension_numbers<[1], [0], [0], [1], [0, 0, 1, 1], [], []>} : vector<16x16xf32>, vector<16x16xf32>, vector<16x16xf32> -> vector<16x16xf32>
    %c16_19 = arith.constant 16 : index
    %c0_20 = arith.constant 0 : index
    %17 = vector.load %arg6[%c16_19, %c0_20] : memref<48x16xf32, #tpu.memory_space<vmem>>, vector<16x16xf32>
    %18 = arith.addf %16, %17 : vector<16x16xf32>
    %c0_21 = arith.constant 0 : index
    %c16_22 = arith.constant 16 : index
    %c0_23 = arith.constant 0 : index
    %19 = vector.load %arg7[%c0_21, %c16_22, %c0_23] : memref<1x48x16xf32, #tpu.memory_space<vmem>>, vector<1x16x16xf32>
    %20 = vector.shape_cast %19 : vector<1x16x16xf32> to vector<16x16xf32>
    %21 = vector.shape_cast %18 : vector<16x16xf32> to vector<1x16x16xf32>
    tpu.vector_store %arg7[%c0_21, %c16_22, %c0_23], %21 {strides = array<i32>} : memref<1x48x16xf32, #tpu.memory_space<vmem>>, vector<1x16x16xf32>,
    %c0_24 = arith.constant 0 : index
    %c0_25 = arith.constant 0 : index
    %c0_26 = arith.constant 0 : index
    %22 = vector.load %arg3[%c0_24, %c0_25, %c0_26] : memref<1x32x16xf32, #tpu.memory_space<vmem>>, vector<1x32x16xf32>
    %23 = vector.shape_cast %22 : vector<1x32x16xf32> to vector<32x16xf32>
    %c32 = arith.constant 32 : index
    %c0_27 = arith.constant 0 : index
    %24 = vector.load %arg5[%c32, %c0_27] : memref<48x32xf32, #tpu.memory_space<vmem>>, vector<16x32xf32>
    %cst_28 = arith.constant dense<0.000000e+00> : vector<16x16xf32>
    %25 = tpu.matmul %24, %23, %cst_28 {dimension_numbers = #tpu.dot_dimension_numbers<[1], [0], [0], [1], [0, 0, 1, 1], [], []>} : vector<16x32xf32>, vector<32x16xf32>, vector<16x16xf32> -> vector<16x16xf32>
    %c32_29 = arith.constant 32 : index
    %c0_30 = arith.constant 0 : index
    %26 = vector.load %arg6[%c32_29, %c0_30] : memref<48x16xf32, #tpu.memory_space<vmem>>, vector<16x16xf32>
    %27 = arith.addf %25, %26 : vector<16x16xf32>
    %c0_31 = arith.constant 0 : index
    %c32_32 = arith.constant 32 : index
    %c0_33 = arith.constant 0 : index
    %28 = vector.load %arg7[%c0_31, %c32_32, %c0_33] : memref<1x48x16xf32, #tpu.memory_space<vmem>>, vector<1x16x16xf32>
    %29 = vector.shape_cast %28 : vector<1x16x16xf32> to vector<16x16xf32>
    %30 = vector.shape_cast %27 : vector<16x16xf32> to vector<1x16x16xf32>
    tpu.vector_store %arg7[%c0_31, %c32_32, %c0_33], %30 {strides = array<i32>} : memref<1x48x16xf32, #tpu.memory_space<vmem>>, vector<1x16x16xf32>,
    return
  }
  func.func @transform_0(%arg0: i32) -> (i32, i32, i32) {
    %c0_i32 = arith.constant 0 : i32
    %c0_i32_0 = arith.constant 0 : i32
    %c0_i32_1 = arith.constant 0 : i32
    return %arg0, %c0_i32, %c0_i32_0 : i32, i32, i32
  }
  func.func @transform_1(%arg0: i32) -> (i32, i32, i32) {
    %c0_i32 = arith.constant 0 : i32
    %c0_i32_0 = arith.constant 0 : i32
    %c0_i32_1 = arith.constant 0 : i32
    return %arg0, %c0_i32, %c0_i32_0 : i32, i32, i32
  }
  func.func @transform_2(%arg0: i32) -> (i32, i32, i32) {
    %c0_i32 = arith.constant 0 : i32
    %c0_i32_0 = arith.constant 0 : i32
    %c0_i32_1 = arith.constant 0 : i32
    return %arg0, %c0_i32, %c0_i32_0 : i32, i32, i32
  }
  func.func @transform_3(%arg0: i32) -> (i32, i32) {
    %c0_i32 = arith.constant 0 : i32
    %c0_i32_0 = arith.constant 0 : i32
    %c0_i32_1 = arith.constant 0 : i32
    return %c0_i32, %c0_i32_0 : i32, i32
  }
  func.func @transform_4(%arg0: i32) -> (i32, i32) {
    %c0_i32 = arith.constant 0 : i32
    %c0_i32_0 = arith.constant 0 : i32
    %c0_i32_1 = arith.constant 0 : i32
    return %c0_i32, %c0_i32_0 : i32, i32
  }
  func.func @transform_5(%arg0: i32) -> (i32, i32) {
    %c0_i32 = arith.constant 0 : i32
    %c0_i32_0 = arith.constant 0 : i32
    %c0_i32_1 = arith.constant 0 : i32
    return %c0_i32, %c0_i32_0 : i32, i32
  }
  func.func @transform_6(%arg0: i32) -> (i32, i32, i32) {
    %c0_i32 = arith.constant 0 : i32
    %c0_i32_0 = arith.constant 0 : i32
    %c0_i32_1 = arith.constant 0 : i32
    return %arg0, %c0_i32, %c0_i32_0 : i32, i32, i32
  }
}

</mosaic_0001>

<bundles_post_ra>
// kernel: tpu_custom_call.1
= control target key start
LH: loop header
LB: loop body
LE: loop exit
PB: predicated region body
PF: predicated region fallthrough
CT: control target
= control target key end

     0   :  { %s1072_s21 = smov 0   ;;  %s1284_s0 = inlined_call_operand.vmem [shape: f32[2,8,256], index: 0, kind: input, shape index: {}]   ;;  %s1285_s1 = inlined_call_operand.vmem [shape: f32[2,16,64], index: 1, kind: input, shape index: {}]   ;;  %s1286_s2 = inlined_call_operand.vmem [shape: f32[2,32,16], index: 2, kind: input, shape index: {}]   ;;  %s1287_s3 = inlined_call_operand.vmem [shape: f32[320,16], index: 3, kind: input, shape index: {}]   ;;  %s1288_s4 = inlined_call_operand.vmem [shape: f32[48,32], index: 4, kind: input, shape index: {}]   ;;  %s1289_s5 = inlined_call_operand.vmem [shape: f32[48,16], index: 5, kind: input, shape index: {}]   ;;  %s1290_s6 = inlined_call_operand.vmem [shape: f32[2,48,16], index: 6, kind: output, shape index: {}]  }
   0x1 LB: > { %s835_s22 = sadd.s32 4294967295, %s1035_s21   ;;  %p839_p0 = scmp.ge.s32.totalorder %s1035_s21, 1  ;;  %s1035_s21 = sphi %s1072_s21, %s16_s21  }
   0x2   : > { %p232_p1 = scmp.lt.s32.totalorder %s1035_s21, 3 }
   0x4   : > { %p233_p2 = pnand %p839_p0, %p232_p1 }
   0x5   : > { %v310_v0 = vld [vmem:[%s1287_s3 + $0x80] sm:$0xff] (!%p233_p2)  ;;  %v311_v1 = vld [vmem:[%s1287_s3 + $0x88] sm:$0xff] (!%p233_p2)  ;;  %p272_p3 = scmp.lt.s32.totalorder (!%p233_p2), %s835_s22, 1  ;;  %v312_v5 = vld [vmem:[%s1287_s3 + $0x90] sm:$0xff] (!%p233_p2)  ;;  %vm400_vm0 = vcmask (!%p233_p2), 64512   ;;  %vm495_vm1 = vcmask (!%p233_p2), 523264  }
   0x6   : > { %236 = sbr.rel (%p233_p2) target bundleno = 716 (0x2cc), region = 44  ;;  %v294_v2 = vld [vmem:[%s1287_s3] sm:$0xff] (!%p233_p2)  ;;  %v960_v3 = vpack.c.bf16 (!%p233_p2), %v311_v1, %v310_v0  ;;  %v295_v4 = vld [vmem:[%s1287_s3 + $0x8] sm:$0xff] (!%p233_p2)  ;;  %v313_v6 = vld [vmem:[%s1287_s3 + $0x98] sm:$0xff] (!%p233_p2)  ;;  %vm482_vm2 = vcmask (!%p233_p2), 130048   ;;  %vm672_vm3 = vcmask (!%p233_p2), 261120  }
   0x7   : > { %v962_v7 = vpack.c.bf16 (!%p233_p2), %v295_v4, %v294_v2  ;;  %v964_v8 = vpack.c.bf16 (!%p233_p2), %v313_v6, %v312_v5  ;;  %v296_v9 = vld [vmem:[%s1287_s3 + $0x10] sm:$0xff] (!%p233_p2)  ;;  %v297_v10 = vld [vmem:[%s1287_s3 + $0x18] sm:$0xff] (!%p233_p2)  ;;  %v314_v11 = vld [vmem:[%s1287_s3 + $0xa0] sm:$0xff] (!%p233_p2) }
   0x8   : > { %961 = vmatprep.subr.bf16.mxu0 (!%p233_p2), %v960_v3  ;;  %v315_v12 = vld [vmem:[%s1287_s3 + $0xa8] sm:$0xff] (!%p233_p2)  ;;  %v966_v13 = vpack.c.bf16 (!%p233_p2), %v297_v10, %v296_v9  ;;  %v298_v15 = vld [vmem:[%s1287_s3 + $0x20] sm:$0xff] (!%p233_p2)  ;;  %v316_v17 = vld [vmem:[%s1287_s3 + $0xb0] sm:$0xff] (!%p233_p2) }
   0x9   : > { %963 = vmatpush3.bf16.msra.mxu0 (!%p233_p2), %v962_v7  ;;  %v968_v14 = vpack.c.bf16 (!%p233_p2), %v315_v12, %v314_v11  ;;  %v299_v16 = vld [vmem:[%s1287_s3 + $0x28] sm:$0xff] (!%p233_p2)  ;;  %v317_v18 = vld [vmem:[%s1287_s3 + $0xb8] sm:$0xff] (!%p233_p2)  ;;  %v300_v21 = vld [vmem:[%s1287_s3 + $0x30] sm:$0xff] (!%p233_p2) }
   0xa   : > { %965 = vmatprep.subr.bf16.mxu0 (!%p233_p2), %v964_v8  ;;  %v970_v19 = vpack.c.bf16 (!%p233_p2), %v299_v16, %v298_v15  ;;  %v972_v20 = vpack.c.bf16 (!%p233_p2), %v317_v18, %v316_v17  ;;  %v301_v22 = vld [vmem:[%s1287_s3 + $0x38] sm:$0xff] (!%p233_p2)  ;;  %v318_v23 = vld [vmem:[%s1287_s3 + $0xc0] sm:$0xff] (!%p233_p2)  ;;  %v319_v24 = vld [vmem:[%s1287_s3 + $0xc8] sm:$0xff] (!%p233_p2) }
   0xb   : > { %v974_v26 = vpack.c.bf16 (!%p233_p2), %v301_v22, %v300_v21  ;;  %v976_v27 = vpack.c.bf16 (!%p233_p2), %v319_v24, %v318_v23  ;;  %v302_v28 = vld [vmem:[%s1287_s3 + $0x40] sm:$0xff] (!%p233_p2)  ;;  %v303_v29 = vld [vmem:[%s1287_s3 + $0x48] sm:$0xff] (!%p233_p2)  ;;  %v320_v30 = vld [vmem:[%s1287_s3 + $0xd0] sm:$0xff] (!%p233_p2) }
   0xc   : > { %v321_v31 = vld [vmem:[%s1287_s3 + $0xd8] sm:$0xff] (!%p233_p2)  ;;  %v978_v32 = vpack.c.bf16 (!%p233_p2), %v303_v29, %v302_v28  ;;  %v304_v34 = vld [vmem:[%s1287_s3 + $0x50] sm:$0xff] (!%p233_p2)  ;;  %v322_v36 = vld [vmem:[%s1287_s3 + $0xe0] sm:$0xff] (!%p233_p2) }
   0xd   : > { %s1292_s22 = smov (!%p272_p3, %s835_s22), 1  ;;  %967 = vmatpush3.bf16.msra.mxu0 %v966_v13  ;;  %v980_v33 = vpack.c.bf16 %v321_v31, %v320_v30  ;;  %v305_v35 = vld [vmem:[%s1287_s3 + $0x58] sm:$0xff]  ;;  %v323_v37 = vld [vmem:[%s1287_s3 + $0xe8] sm:$0xff]  ;;  %v306_v40 = vld [vmem:[%s1287_s3 + $0x60] sm:$0xff] }
   0xe   : > { %s857_s19 = sshll.u32 %s1292_s22, 4  ;;  %969 = vmatprep.subr.bf16.mxu0 %v968_v14  ;;  %v982_v38 = vpack.c.bf16 %v305_v35, %v304_v34  ;;  %v984_v39 = vpack.c.bf16 %v323_v37, %v322_v36  ;;  %v307_v41 = vld [vmem:[%s1287_s3 + $0x68] sm:$0xff]  ;;  %v324_v42 = vld [vmem:[%s1287_s3 + $0xf0] sm:$0xff]  ;;  %v325_v43 = vld [vmem:[%s1287_s3 + $0xf8] sm:$0xff]  ;;  %s1020_s7 = smul.u32 48, %s1292_s22 }
   0xf   : > { %s1130_s8 = scalar_lea.vmem %s1284_s0, %s857_s19  ;;  %v986_v44 = vpack.c.bf16 %v307_v41, %v306_v40  ;;  %v988_v45 = vpack.c.bf16 %v325_v43, %v324_v42  ;;  %v308_v46 = vld [vmem:[%s1287_s3 + $0x70] sm:$0xff]  ;;  %v309_v47 = vld [vmem:[%s1287_s3 + $0x78] sm:$0xff]  ;;  %v396_v50 = vld [vmem:[%s1288_s4] sm:$0xff]  ;;  %s281_s12 = scalar_lea.vmem %s1285_s1, %s857_s19 }
  0x10   : > { %v293_v25 = vld [vmem:[%s1130_s8 + $0x8] sm:$0xff]  ;;  %v990_v48 = vpack.c.bf16 %v309_v47, %v308_v46  ;;  %v292_v49 = vld [vmem:[%s1130_s8] sm:$0xff]  ;;  %920 = vmatprep.mubr.msk.f32.mxu1 %vm400_vm0, %v396_v50  ;;  %v489_v55 = vld [vmem:[%s1287_s3 + $0x110] sm:$0xff]  ;;  %s1241_s14 = scalar_lea.vmem %s1290_s6, %s1020_s7  ;;  %s859_s15 = sshll.u32 %s1292_s22, 5 }
  0x11   : > { %390 = vmatprep.mubr.f32.mxu0 %v293_v25  ;;  %971 = vmatpush3.bf16.msra.mxu0 %v970_v19  ;;  %v487_v51 = vld [vmem:[%s1287_s3 + $0x100] sm:$0xff]  ;;  %v488_v52 = vld [vmem:[%s1287_s3 + $0x108] sm:$0xff]  ;;  %v490_v56 = vld [vmem:[%s1287_s3 + $0x118] sm:$0xff]  ;;  %s286_s18 = scalar_lea.vmem %s1286_s2, %s859_s15 }
  0x12   : > { %973 = vmatprep.subr.bf16.mxu0 %v972_v20  ;;  %v992_v58 = vpack.c.bf16 %v488_v52, %v487_v51  ;;  %v397_v59 = vld [vmem:[%s1288_s4 + $0x8] sm:$0xff]  ;;  %v996_v60 = vpack.c.bf16 %v490_v56, %v489_v55  ;;  %v485_v61 = vld [vmem:[%s281_s12] sm:$0xff]  ;;  %v493_v1 = vld [vmem:[%s1287_s3 + $0x130] sm:$0xff] }
  0x13   : > { %v491_v62 = vld [vmem:[%s1287_s3 + $0x120] sm:$0xff]  ;;  %v492_v63 = vld [vmem:[%s1287_s3 + $0x128] sm:$0xff]  ;;  %v494_v2 = vld [vmem:[%s1287_s3 + $0x138] sm:$0xff] }
  0x14   : > { %v1000_v0 = vpack.c.bf16 %v492_v63, %v491_v62  ;;  %v1004_v3 = vpack.c.bf16 %v494_v2, %v493_v1  ;;  %v486_v4 = vld [vmem:[%s281_s12 + $0x8] sm:$0xff]  ;;  %v577_v5 = vld [vmem:[%s1288_s4 + $0x10] sm:$0xff]  ;;  %v398_v7 = vld [vmem:[%s1289_s5] sm:$0xff] }
  0x15   : > { %975 = vmatpush3.bf16.msra.mxu0 %v974_v26  ;;  %v399_v6 = vld [vmem:[%s1289_s5 + $0x8] sm:$0xff]  ;;  %v664_v12 = vld [vmem:[%s286_s18] sm:$0xff]  ;;  %v666_v18 = vld [vmem:[%s286_s18 + $0x10] sm:$0xff] }
  0x16   : > { %977 = vmatprep.subr.bf16.mxu0 %v976_v27  ;;  %v665_v13 = vld [vmem:[%s286_s18 + $0x8] sm:$0xff]  ;;  %v667_v19 = vld [vmem:[%s286_s18 + $0x18] sm:$0xff]  ;;  %v668_v22 = vld [vmem:[%s1288_s4 + $0x20] sm:$0xff] }
  0x17   : > { %v1012_v17 = vpack.c.bf16 %v665_v13, %v664_v12  ;;  %v578_v20 = vld [vmem:[%s1288_s4 + $0x18] sm:$0xff]  ;;  %v1016_v21 = vpack.c.bf16 %v667_v19, %v666_v18  ;;  %v669_v23 = vld [vmem:[%s1288_s4 + $0x28] sm:$0xff]  ;;  %v579_v25 = vld [vmem:[%s1289_s5 + $0x10] sm:$0xff] }
  0x18   : > { %v580_v24 = vld [vmem:[%s1289_s5 + $0x18] sm:$0xff]  ;;  %v671_v30 = vld [vmem:[%s1289_s5 + $0x28] sm:$0xff]  ;;  %v670_v31 = vld [vmem:[%s1289_s5 + $0x20] sm:$0xff] }
  0x19   : > { %979 = vmatpush3.bf16.msra.mxu0 %v978_v32 }
  0x1a   : > { %981 = vmatprep.subr.bf16.mxu0 %v980_v33 }
  0x1d   : > { %983 = vmatpush3.bf16.msra.mxu0 %v982_v38 }
  0x1e   : > { %985 = vmatprep.subr.bf16.mxu0 %v984_v39 }
  0x21   : > { %987 = vmatpush3.bf16.msra.mxu0 %v986_v44 }
  0x22   : > { %989 = vmatprep.subr.bf16.mxu0 %v988_v45 }
  0x25   : > { %991 = vmatpush3.bf16.msra.mxu0 %v990_v48 }
  0x28   : > { %391 = vmatmul.mubr.f32.vlgmr.msra.gmra.mrb[0].mxu0 %v292_v49 }
  0xfb   : > { %v892_v53 = vpop.f32.mrb[0].mxu0 }
  0xfc   : > { %v893_v54 = vpop.f32.mrb[1].mxu0 }
  0xfd   : > { %v894_v57 = vadd.f32 %v893_v54, %v892_v53 }
  0xff   : > { %918 = vmatprep.subr.mxu1 %v894_v57 }
 0x100   : > { %919 = vmatpush3.msra.mxu1 %v894_v57 }
 0x101   : > { %921 = vmatmul.mubr.msk.f32.vlgmr.msra.gmra.mrb[0].mxu1 %vm400_vm0, %v397_v59  ;;  %993 = vmatprep.subr.bf16.mxu1 %v992_v58 }
 0x102   : > { %995 = vmatpush3.bf16.msra.mxu1 %v992_v58  ;;  %939 = vmatprep.mubr.msk.f32.mxu1 %vm495_vm1, %v485_v61 }
 0x103   : > { %997 = vmatprep.subr.bf16.mxu1 %v996_v60 }
 0x106   : > { %999 = vmatpush3.bf16.msra.mxu1 %v996_v60 }
 0x107   : > { %1001 = vmatprep.subr.bf16.mxu1 %v1000_v0 }
 0x10a   : > { %1003 = vmatpush3.bf16.msra.mxu1 %v1000_v0 }
 0x10b   : > { %1005 = vmatprep.subr.bf16.mxu1 %v1004_v3 }
 0x10e   : > { %1007 = vmatpush3.bf16.msra.mxu1 %v1004_v3 }
 0x111   : > { %940 = vmatmul.mubr.msk.f32.vlgmr.msra.gmra.mrb[2].mxu1 %vm495_vm1, %v486_v4 }
 0x112   : > { %946 = vmatprep.mubr.msk.f32.mxu1 %vm482_vm2, %v577_v5 }
 0x1d4   : > { %v922_v8 = vpop.f32.mrb[0].mxu1 }
 0x1d5   : > { %v479_v9 = vadd.f32 %v922_v8, %v399_v6  ;;  %v473_v10 = vpop.f32.mrb[1].mxu1 }
 0x1d6   : > { %v474_v11 = vadd.f32 %v473_v10, %v398_v7 }
 0x1d7   : > { %484 = vst.msk [vmem:[%s1241_s14 + $0x8] sm:$0xff] %vm482_vm2, %v479_v9 }
 0x1d8   : > { %483 = vst.msk [vmem:[%s1241_s14] sm:$0xff] %vm482_vm2, %v474_v11 }
 0x1e4   : > { %v941_v14 = vpop.f32.mrb[2].mxu1 }
 0x1e5   : > { %v568_v15 = vpop.f32.mrb[3].mxu1 }
 0x1e6   : > { %v1008_v16 = vpack.c.bf16 %v941_v14, %v568_v15 }
 0x1e8   : > { %1009 = vmatprep.subr.bf16.mxu1 %v1008_v16 }
 0x1e9   : > { %1011 = vmatpush3.bf16.msra.mxu1 %v1008_v16 }
 0x1ea   : > { %1013 = vmatprep.subr.bf16.mxu1 %v1012_v17 }
 0x1ec   : > { %947 = vmatmul.mubr.msk.f32.vlgmr.msra.gmra.mrb[4].mxu1 %vm482_vm2, %v578_v20 }
 0x1ed   : > { %1015 = vmatpush3.bf16.msra.mxu1 %v1012_v17  ;;  %957 = vmatprep.mubr.msk.f32.mxu1 %vm672_vm3, %v668_v22 }
 0x1ee   : > { %1017 = vmatprep.subr.bf16.mxu1 %v1016_v21 }
 0x1f1   : > { %1019 = vmatpush3.bf16.msra.mxu1 %v1016_v21 }
 0x1f4   : > { %958 = vmatmul.mubr.msk.f32.vlgmr.msra.gmra.mrb[6].mxu1 %vm672_vm3, %v669_v23 }
 0x2bf   : > { %v948_v26 = vpop.f32.mrb[4].mxu1 }
 0x2c0   : > { %v659_v27 = vadd.f32 %v948_v26, %v580_v24  ;;  %v653_v28 = vpop.f32.mrb[5].mxu1 }
 0x2c1   : > { %v654_v29 = vadd.f32 %v653_v28, %v579_v25 }
 0x2c2   : > { %663 = vst.msk [vmem:[%s1241_s14 + $0x18] sm:$0xff] %vm482_vm2, %v659_v27 }
 0x2c3   : > { %662 = vst.msk [vmem:[%s1241_s14 + $0x10] sm:$0xff] %vm482_vm2, %v654_v29 }
 0x2c7   : > { %v959_v32 = vpop.f32.mrb[6].mxu1 }
 0x2c8   : > { %v751_v33 = vadd.f32 %v959_v32, %v671_v30  ;;  %v745_v34 = vpop.f32.mrb[7].mxu1 }
 0x2c9   : > { %v746_v35 = vadd.f32 %v745_v34, %v670_v31 }
 0x2ca   : > { %755 = vst.msk [vmem:[%s1241_s14 + $0x28] sm:$0xff] %vm482_vm2, %v751_v33 }
 0x2cb   : > { %754 = vst.msk [vmem:[%s1241_s14 + $0x20] sm:$0xff] %vm482_vm2, %v746_v35 }
 0x2cc PF: > { %s16_s21 = sadd.s32 1, %s1035_s21  }
 0x2cd   : > { %p13_p4 = scmp.ge.s32.totalorder %s16_s21, 4  }
 0x2cf   :  { %15 = sbr.rel (!%p13_p4) target bundleno = 1 (0x1), region = 80 }

</bundles_post_ra>
